<compile_context>
chip_gen: v7x
topology: tpu7x:2x2x1
jax: 0.10.0
libtpu: 0.0.40
codegen_flags: <defaults>
</compile_context>

<pallas_src>
import functools

import jax
import jax.numpy as jnp
from jax.experimental import pallas as pl
from jax.experimental.pallas import tpu as pltpu


def _round_up(a, b):
    return ((a + b - 1) // b) * b


def _round_down(a, b):
    return (a // b) * b


def _dendro_kernel(x_ref, idx_ref, delta_ref, path_ref, out_ref):
    # x_ref:     (tb, F)   batch tile of inputs (f32 or bf16)
    # idx_ref:   (1, tb)   int32 node index per sample (lane-dense)
    # delta_ref: (E1, F)   [delta_mat.T ; root_weights ; zero-pad]  (resident)
    # path_ref:  (E1, N)   [path_mat   ; ones         ; zero-pad]  (resident, bf16)
    # out_ref:   (1, tb)   lane-dense per-sample regression output (f32)
    tb = idx_ref.shape[1]
    n_nodes = path_ref.shape[1]

    # xd_t[e, b] = sum_f delta_aug_t[e, f] * x[b, f]  -- MXU contraction over F,
    # result already has batch in the lane dimension.
    xd_t = jax.lax.dot_general(
        delta_ref[...], x_ref[...],
        dimension_numbers=(((1,), (1,)), ((), ())),
        preferred_element_type=jnp.float32)                       # (E1, tb) f32

    # In-kernel gather of path columns via a bf16 one-hot matmul (values are
    # exactly 0/1, so bf16 is lossless):
    #   pb_t[e, b] = path_aug[e, node_idx[b]]
    onehot = (jax.lax.broadcasted_iota(jnp.int32, (n_nodes, tb), 0)
              == idx_ref[...]).astype(jnp.bfloat16)                # (N, tb) bf16
    pb_t = jnp.dot(path_ref[...], onehot,
                   preferred_element_type=jnp.float32)             # (E1, tb) f32

    # out[b] = sum_e xd_t[e, b] * pb_t[e, b]  -- sublane reduction, lane-dense.
    out_ref[...] = jnp.sum(xd_t * pb_t, axis=0, keepdims=True)     # (1, tb)


def _vmem_cap_bytes():
    """Generation-aware VMEM request cap (bytes)."""
    phys = 64 * 1024 * 1024          # conservative default (v7x per-TC VMEM)
    try:
        phys = int(pltpu.get_tpu_info().vmem_capacity_bytes)
    except Exception:
        pass
    if phys > 96 * 1024 * 1024:      # v5e / v6e: 128 MiB physical
        return 100 * 1024 * 1024
    return 48 * 1024 * 1024          # v7x: 64 MiB physical, leave scratch room


def _plan_tiles(B, F, N, e1, x_itemsize, cap_bytes, tb_request=None):
    """Pick the batch tile (lanes) and estimate the kernel's VMEM footprint."""
    b_pad128 = _round_up(max(B, 1), 128)
    # Bytes that scale with tb (includes intermediates + 8-sublane padding of
    # the (1, tb) idx / out blocks).
    per_tb = (2 * F * x_itemsize       # x tile, double-buffered
              + 2 * 8 * 4              # idx tile (padded to 8 sublanes), 2 bufs
              + 2 * 8 * 4              # out tile (padded to 8 sublanes), 2 bufs
              + 2 * e1 * 4             # xd_t + pb_t f32 intermediates
              + N * 2)                 # bf16 one-hot intermediate
    # Tile-independent bytes: resident params, single-buffered.
    fixed = e1 * F * x_itemsize + e1 * N * 2
    if tb_request is None:
        budget = max((cap_bytes * 3) // 4 - fixed, 128 * per_tb)
        tb = _round_down(budget // per_tb, 128)
        tb = max(128, min(tb, 4096))
    else:
        tb = max(128, _round_up(tb_request, 128))
    tb = min(tb, b_pad128)
    # Keep grid >= 2 when the batch allows it (both v7x TensorCores get work).
    if b_pad128 >= 256:
        tb = min(tb, max(128, _round_down(b_pad128 // 2, 128)))
    footprint = fixed + per_tb * tb
    return tb, footprint
    # TODO(synk): for very large F (double-buffered (tb, F) tiles no longer fit
    # the budget) add an innermost "arbitrary" feature grid axis with a
    # pltpu.VMEM((e1, tb), f32) accumulator instead of shrinking tb.


@functools.partial(jax.jit, static_argnames=("tb", "x_bf16"))
def dendro_forward(x, node_idx, root_weights, delta_mat, path_mat, *,
                   tb=None, x_bf16=False):
    """Forward pass of DendroMatrixLinReg.

    x:            (B, F) float   inputs
    node_idx:     (B,)   int     tree-node index per sample
    root_weights: (F,)   float
    delta_mat:    (F, E) float
    path_mat:     (E, N) float   binary ancestry matrix
    returns:      (B,)   float32
    """
    B, F = x.shape
    F2, E = delta_mat.shape
    E2, N = path_mat.shape
    assert F == F2 and E == E2

    x_dtype = jnp.bfloat16 if x_bf16 else jnp.float32
    x = x.astype(x_dtype)
    node_idx = node_idx.astype(jnp.int32)
    root_weights = root_weights.astype(jnp.float32)
    delta_mat = delta_mat.astype(jnp.float32)
    path_mat = path_mat.astype(jnp.float32)

    # Augmented-row count: delta rows + root row, padded to a sublane multiple.
    e1 = _round_up(E + 1, 8)
    x_itemsize = jnp.dtype(x_dtype).itemsize

    # --- batch tiling: lane-dense tiles sized from the VMEM budget -----------
    cap = _vmem_cap_bytes()
    tb, footprint = _plan_tiles(B, F, N, e1, x_itemsize, cap, tb)
    b_pad = _round_up(B, tb)
    if b_pad != B:
        # Padded rows use node_idx=0 but x rows are all-zero, so their outputs
        # are 0 and are sliced away below.
        x = jnp.pad(x, ((0, b_pad - B), (0, 0)))
        node_idx = jnp.pad(node_idx, (0, b_pad - B))
    grid = (b_pad // tb,)

    # --- tiny, parameter-sized prep: fold root into the contraction ----------
    #   eff[b, f] = sum_e delta_aug_t[e, f] * path_aug[e, node_idx[b]]
    # rows [0:E) = delta.T / path_mat, row E = root / ones, rest zero-padded
    # (padded rows contribute exactly 0).
    delta_aug_t = jnp.zeros((e1, F), x_dtype)
    delta_aug_t = delta_aug_t.at[:E, :].set(delta_mat.T.astype(x_dtype))
    delta_aug_t = delta_aug_t.at[E, :].set(root_weights.astype(x_dtype))
    path_aug = jnp.zeros((e1, N), jnp.bfloat16)
    path_aug = path_aug.at[:E, :].set(path_mat.astype(jnp.bfloat16))
    path_aug = path_aug.at[E, :].set(1.0)

    idx_row = node_idx.reshape(1, b_pad)

    # --- VMEM request: footprint + headroom, generation-aware cap ------------
    vmem_limit = int(min(cap, max(2 * footprint, 32 * 1024 * 1024)))

    cost = pl.CostEstimate(
        flops=2 * e1 * b_pad * (F + N) + 2 * e1 * b_pad,
        transcendentals=0,
        bytes_accessed=(b_pad * F * x_itemsize     # x stream (dominant)
                        + b_pad * 4 + b_pad * 4    # idx + out
                        + e1 * F * x_itemsize + e1 * N * 2))

    out = pl.pallas_call(
        _dendro_kernel,
        out_shape=jax.ShapeDtypeStruct((1, b_pad), jnp.float32),
        grid_spec=pl.GridSpec(
            grid=grid,
            in_specs=[
                pl.BlockSpec((tb, F), lambda i: (i, 0)),    # x tile (2 bufs)
                pl.BlockSpec((1, tb), lambda i: (0, i)),    # node idx (lane-dense)
                pl.BlockSpec((e1, F), lambda i: (0, 0),
                             pipeline_mode=pl.Buffered(1)),  # resident delta'
                pl.BlockSpec((e1, N), lambda i: (0, 0),
                             pipeline_mode=pl.Buffered(1)),  # resident path'
            ],
            out_specs=pl.BlockSpec((1, tb), lambda i: (0, i)),
        ),
        compiler_params=pltpu.CompilerParams(
            dimension_semantics=("parallel",),
            vmem_limit_bytes=vmem_limit),
        cost_estimate=cost,
    )(x, idx_row, delta_aug_t, path_aug)
    return out[0, :B]


def _reference_forward(x, node_idx, root_weights, delta_mat, path_mat):
    eff = root_weights[None, :] + (delta_mat @ path_mat[:, node_idx]).T
    return jnp.sum(x * eff, axis=1)


if __name__ == "__main__":
    # Deterministic synthetic setup consistent with the module's __init__.
    B = 1024   # batch size (-> grid of >= 2 batch tiles, both v7x cores busy)
    F = 256    # number of features (len(root_weights))
    E = 32     # number of tree edges (delta_mat columns)
    N = 64     # number of tree nodes (path_mat columns)

    key = jax.random.PRNGKey(0)
    k_x, k_root, k_delta, k_path, k_idx = jax.random.split(key, 5)

    x = jax.random.normal(k_x, (B, F), dtype=jnp.float32)
    # init_root=True in the module -> normal(mean=0, std=0.01)
    root_weights = 0.01 * jax.random.normal(k_root, (F,), dtype=jnp.float32)
    # init_deltas=False -> deltas are whatever was passed in; use small randoms.
    delta_mat = 0.05 * jax.random.normal(k_delta, (F, E), dtype=jnp.float32)
    # path_mat is a binary ancestry matrix.
    path_mat = (jax.random.uniform(k_path, (E, N)) < 0.5).astype(jnp.float32)
    node_idx = jax.random.randint(k_idx, (B,), 0, N, dtype=jnp.int32)

    out = dendro_forward(x, node_idx, root_weights, delta_mat, path_mat)
    out = jax.block_until_ready(out)

    ref = _reference_forward(x, node_idx, root_weights, delta_mat, path_mat)
    assert out.shape == (B,)
    max_err = float(jnp.max(jnp.abs(out - ref)))
    assert jnp.allclose(out, ref, atol=1e-4, rtol=1e-4), max_err

    # TODO(synk): delta_loss (p-norm of delta_mat slices) is a training-time
    # regularizer, not part of forward(); left unimplemented in the kernel.
    print("KERNEL_OK")
</pallas_src>

<mosaic_0001>
module attributes {stable_mosaic.version = 11 : i64} {
  func.func @_dendro_kernel(%arg0: i32, %arg1: memref<512x256xf32, #tpu.memory_space<vmem>>, %arg2: memref<1x512xi32, #tpu.memory_space<vmem>>, %arg3: memref<40x256xf32, #tpu.memory_space<vmem>>, %arg4: memref<40x64xbf16, #tpu.memory_space<vmem>>, %arg5: memref<1x512xf32, #tpu.memory_space<vmem>>) attributes {dimension_semantics = [#tpu.dimension_semantics<parallel>], iteration_bounds = array<i64: 2>, scalar_prefetch = 0 : i64, scratch_operands = 0 : i64, tpu.core_type = #tpu.core_type<tc>, window_params = [{transform_indices = @transform_0, window_bounds = array<i64: 512, 256>}, {transform_indices = @transform_1, window_bounds = array<i64: 1, 512>}, {pipeline_mode = #tpu.pipeline_mode<synchronous>, transform_indices = @transform_2, window_bounds = array<i64: 40, 256>}, {pipeline_mode = #tpu.pipeline_mode<synchronous>, transform_indices = @transform_3, window_bounds = array<i64: 40, 64>}, {transform_indices = @transform_4, window_bounds = array<i64: 1, 512>}]} {
    %c0 = arith.constant 0 : index
    %c0_0 = arith.constant 0 : index
    %0 = vector.load %arg3[%c0, %c0_0] : memref<40x256xf32, #tpu.memory_space<vmem>>, vector<40x256xf32>
    %c0_1 = arith.constant 0 : index
    %c0_2 = arith.constant 0 : index
    %1 = vector.load %arg1[%c0_1, %c0_2] : memref<512x256xf32, #tpu.memory_space<vmem>>, vector<512x256xf32>
    %cst = arith.constant dense<0.000000e+00> : vector<40x512xf32>
    %2 = tpu.matmul %0, %1, %cst {dimension_numbers = #tpu.dot_dimension_numbers<[1], [1], [0], [0], [0, 0, 1, 0], [], []>} : vector<40x256xf32>, vector<512x256xf32>, vector<40x512xf32> -> vector<40x512xf32>
    %3 = tpu.iota {dimensions = array<i32: 0>} : vector<64x512xi32>
    %c0_3 = arith.constant 0 : index
    %c0_4 = arith.constant 0 : index
    %4 = vector.load %arg2[%c0_3, %c0_4] : memref<1x512xi32, #tpu.memory_space<vmem>>, vector<1x512xi32>
    %5 = vector.broadcast %4 : vector<1x512xi32> to vector<64x512xi32>
    %6 = arith.cmpi eq, %3, %5 : vector<64x512xi32>
    %7 = arith.extui %6 : vector<64x512xi1> to vector<64x512xi32>
    %8 = arith.sitofp %7 : vector<64x512xi32> to vector<64x512xf32>
    %9 = arith.truncf %8 : vector<64x512xf32> to vector<64x512xbf16>
    %c0_5 = arith.constant 0 : index
    %c0_6 = arith.constant 0 : index
    %10 = vector.load %arg4[%c0_5, %c0_6] : memref<40x64xbf16, #tpu.memory_space<vmem>>, vector<40x64xbf16>
    %cst_7 = arith.constant dense<0.000000e+00> : vector<40x512xf32>
    %11 = tpu.matmul %10, %9, %cst_7 {dimension_numbers = #tpu.dot_dimension_numbers<[1], [0], [0], [1], [0, 0, 1, 1], [], []>} : vector<40x64xbf16>, vector<64x512xbf16>, vector<40x512xf32> -> vector<40x512xf32>
    %12 = arith.mulf %2, %11 : vector<40x512xf32>
    %cst_8 = arith.constant dense<0.000000e+00> : vector<512xf32>
    %13 = vector.multi_reduction <add>, %12, %cst_8 [0] : vector<40x512xf32> to vector<512xf32>
    %14 = vector.shape_cast %13 : vector<512xf32> to vector<1x512xf32>
    %c0_9 = arith.constant 0 : index
    %c0_10 = arith.constant 0 : index
    %15 = vector.load %arg5[%c0_9, %c0_10] : memref<1x512xf32, #tpu.memory_space<vmem>>, vector<1x512xf32>
    tpu.vector_store %arg5[%c0_9, %c0_10], %14 {strides = array<i32>} : memref<1x512xf32, #tpu.memory_space<vmem>>, vector<1x512xf32>,
    return
  }
  func.func @transform_0(%arg0: i32) -> (i32, i32) {
    %c0_i32 = arith.constant 0 : i32
    %c0_i32_0 = arith.constant 0 : i32
    return %arg0, %c0_i32 : i32, i32
  }
  func.func @transform_1(%arg0: i32) -> (i32, i32) {
    %c0_i32 = arith.constant 0 : i32
    %c0_i32_0 = arith.constant 0 : i32
    return %c0_i32, %arg0 : i32, i32
  }
  func.func @transform_2(%arg0: i32) -> (i32, i32) {
    %c0_i32 = arith.constant 0 : i32
    %c0_i32_0 = arith.constant 0 : i32
    %c0_i32_1 = arith.constant 0 : i32
    return %c0_i32, %c0_i32_0 : i32, i32
  }
  func.func @transform_3(%arg0: i32) -> (i32, i32) {
    %c0_i32 = arith.constant 0 : i32
    %c0_i32_0 = arith.constant 0 : i32
    %c0_i32_1 = arith.constant 0 : i32
    return %c0_i32, %c0_i32_0 : i32, i32
  }
  func.func @transform_4(%arg0: i32) -> (i32, i32) {
    %c0_i32 = arith.constant 0 : i32
    %c0_i32_0 = arith.constant 0 : i32
    return %c0_i32, %arg0 : i32, i32
  }
}

</mosaic_0001>

<bundles_post_ra>
// kernel: dendro_forward.1
= control target key start
LH: loop header
LB: loop body
LE: loop exit
PB: predicated region body
PF: predicated region fallthrough
CT: control target
= control target key end

     0   :  { %9 = vsyncpa [#allocation3], 0  ;;  %s1911_s0 = inlined_call_operand.hbm [shape: f32[1024,256], index: 0, kind: input, shape index: {}]   ;;  %s1912_s1 = inlined_call_operand.vmem [shape: s32[1,1024], index: 1, kind: input, shape index: {}]   ;;  %s1913_s2 = inlined_call_operand.vmem [shape: f32[40,256], index: 2, kind: input, shape index: {}]   ;;  %s1914_s3 = inlined_call_operand.vmem [shape: bf16[40,64], index: 3, kind: input, shape index: {}]   ;;  %s1915_s4 = inlined_call_operand.hbm [shape: f32[1,1024], index: 4, kind: output, shape index: {}]  }
   0x1   :  { %11 = vsyncpa [#allocation3 + $0x1], 0 }
   0x2   :  { %12 = vsyncpa [#allocation4], 0 }
   0x3   :  { %14 = vsyncpa [#allocation4 + $0x1], 0  ;;  %s1447_s15 = smov 0   ;;  %s1449_s16 = smov 0  }
   0x4   :  { %s1451_s17 = smov 0   ;;  %s1453_s18 = smov 0  }
   0x5 LB: > { %s1468_s19 = sadd.s32 4294967295, %s1413_s18   ;;  %s1043_s20 = sadd.s32 4294967294, %s1413_s18   ;;  %s1413_s18 = sphi %s1453_s18, %s1938_s18   ;;  %s1409_s17 = sphi %s1451_s17, %s1937_s17   ;;  %s1405_s16 = sphi %s1449_s16, %s1936_s16   ;;  %s1401_s15 = sphi %s1447_s15, %s1935_s15  }
   0x6   : > { %s1472_s21 = sadd.s32 1, %s1413_s18   ;;  %s27_s22 = sadd.s32 1, %s1409_s17 }
   0x7   : > { %s24_s23 = ssub.s32 %s1413_s18, %s1472_s21  ;;  %p34_p0 = scmp.ne.s32.totalorder %s1409_s17, %s1405_s16 }
   0x8   : > { %p25_p1 = scmp.eq.s32.totalorder %s24_s23, 0  ;;  %p35_p2 = scmp.eq.s32.totalorder %s1413_s18, 0 }
   0x9   : > { %p40_p3 = scmp.ne.s32.totalorder %s1405_s16, %s1401_s15  ;;  %p41_p4 = scmp.eq.s32.totalorder %s1468_s19, 0 }
   0xa   : > { %s1484_s24 = scalar_select %p25_p1, %s1409_s17, %s27_s22  }
   0xb   : > { %p1486_p5 = por %p35_p2, %p34_p0  ;;  %p1490_p6 = por %p41_p4, %p40_p3 }
   0xc   : > { %p132_p7 = scmp.eq.s32.totalorder %s1468_s19, 1  ;;  %p138_p8 = scmp.eq.s32.totalorder %s1043_s20, 1 }
   0xd   : > { %p1275_p10 = scmp.lt.s32.totalorder %s1413_s18, 2  ;;  %s164_s29 = sand.u32 1, %s1409_s17  }
   0xe   : > { %p1497_p11 = por %p132_p7, %p34_p0  ;;  %p1501_p12 = por %p138_p8, %p40_p3 }
   0xf   : > { %s1133_s30 = sshll.u32 %s1413_s18, 14  ;;  %s1046_s5 = sshll.u32 %s164_s29, 10 }
  0x10   : > { %s1919_s27 = scalar_select %p1497_p11, 1, 0 }
  0x11   : > { %s1920_s28 = scalar_select %p1501_p12, 1, 0 }
  0x12   : > { %s1510_s8 = scalar_lea.hbm %s1911_s0, %s1133_s30  ;;  %s168_s9 = scalar_lea.vmem [#allocation2], %s1046_s5 }
  0x13   : > { %s176_s10 = sshll.u32 %s168_s9, 4  ;;  %p1514_p13 = pnand %p1275_p10, %p1486_p5  ;;  %s1518_s10 = int_to_ptr.vmem [resolvable:$true] %s176_s10 }
  0x14   : > { %s1520_s12 = scalar_lea.sflag [#allocation3], %s164_s29  ;;  %s1317_s13 = scalar_lea.hbm %s1510_s8, 16384 }
  0x15   : > { %p1318_p0 = scmp.ne.s32.totalorder %s1510_s8, %s1317_s13  ;;  %p1319_p1 = pneg %p1514_p13 }
  0x16   : > { %s1322_s22 = scalar_lea.hbm %s1911_s0, 32768  ;;  %p1323_p4 = scmp.lt.u32.totalorder %s1510_s8, %s1911_s0 }
  0x17   : > { %p1320_p2 = pnand %p1319_p1, %p1318_p0  ;;  %p1324_p5 = scmp.lt.u32.totalorder %s1322_s22, %s1317_s13 }
  0x18   : > { %p1326_p8 = scmp.lt.u32.totalorder %s1317_s13, %s1510_s8 }
  0x19   : > { %p1321_p3 = pneg %p1320_p2  ;;  %p1325_p7 = por %p1324_p5, %p1323_p4 }
  0x1b   : > { %p1327_p10 = por %p1326_p8, %p1325_p7 }
  0x1d   : > { %p1328_p9 = pnand %p1327_p10, %p1321_p3 }
  0x1f   : > { %1331 = shalt.err (!%p1328_p9)
}
  0x20   : > { %s1332_s29 = scalar_lea.vmem %s1518_s10, 16384  ;;  %s1415_s30 = smov [#allocation2]  }
  0x21   : > { %p1333_p0 = scmp.ne.s32.totalorder %s1518_s10, %s1332_s29  ;;  %s1337_s5 = sshll.u32 %s1415_s30, 4  ;;  %s1338_s5 = int_to_ptr.vmem [resolvable:$false] %s1337_s5 }
  0x22   : > { %s1339_s6 = scalar_lea.vmem %s1338_s5, 32768  ;;  %p1340_p11 = scmp.lt.s32.totalorder %s1518_s10, %s1338_s5 }
  0x23   : > { %p1335_p2 = pnand %p1333_p0, %p1319_p1  ;;  %p1341_p4 = scmp.lt.s32.totalorder %s1339_s6, %s1332_s29 }
  0x25   : > { %p1336_p12 = pneg %p1335_p2  ;;  %p1342_p5 = por %p1341_p4, %p1340_p11 }
  0x27   : > { %p1343_p7 = pnand %p1342_p5, %p1336_p12 }
  0x29   : > { %1346 = shalt.err (!%p1343_p7)
}
  0x2a   : > { %s1416_s7 = smov 256   ;;  %s1417_s9 = smov 16  }
  0x2b   : > { %1270 = dma.hbm_to_vmem [thread:$0]  (!%p1514_p13), %s1510_s8, 16384, %s1518_s10, %s1520_s12, %s1416_s7, %s1416_s7, %s1417_s9  }
  0x2c   : > { %p1050_p9 = scmp.ge.s32.totalorder %s1413_s18, 1  ;;  %p192_p1 = scmp.lt.s32.totalorder %s1413_s18, 3 }
  0x2e   : > { %p193_p3 = pnand %p1050_p9, %p192_p1 }
  0x2f   : > { %s1551_s13 = sand.u32 (!%p193_p3), 1, %s1405_s16  }
  0x30   : > { %196 = sbr.rel (%p193_p3) target bundleno = 476 (0x1dc), region = 36  ;;  %s1051_s14 = sshll.u32 (!%p193_p3), %s1551_s13, 10 }
  0x31   : > { %s199_s20 = scalar_lea.sflag (!%p193_p3), [#allocation3], %s1551_s13  ;;  %s1555_s22 = scalar_lea.vmem (!%p193_p3), [#allocation2], %s1051_s14 }
  0x37   : > { %1392 = dma.done.wait (%p1490_p6), %s199_s20, 16384  }
  0x38   : > { %1394 = vsyncadd (%p1490_p6), %s199_s20, 4294950912  ;;  %v250_v0 = vld [vmem:[%s1555_s22 + $0x8] sm:$0xff]  ;;  %v252_v1 = vld [vmem:[%s1555_s22 + $0x18] sm:$0xff]  ;;  %s1053_s10 = sshll.u32 %s1468_s19, 2  ;;  %s1052_s20 = sshll.u32 %s1551_s13, 2 }
  0x39   : > { %v314_v2 = vld [vmem:[%s1555_s22 + $0x208] sm:$0xff]  ;;  %v1135_v3 = vpack.c.bf16 %v252_v1, %v250_v0  ;;  %v316_v4 = vld [vmem:[%s1555_s22 + $0x218] sm:$0xff]  ;;  %v249_v5 = vld [vmem:[%s1555_s22] sm:$0xff]  ;;  %p233_p6 = scmp.lt.s32.totalorder %s1053_s10, 7  ;;  %s230_s26 = scalar_lea.vmem [#allocation5], %s1052_s20 }
  0x3a   : > { %v251_v6 = vld [vmem:[%s1555_s22 + $0x10] sm:$0xff]  ;;  %v1199_v7 = vpack.c.bf16 %v316_v4, %v314_v2  ;;  %v313_v9 = vld [vmem:[%s1555_s22 + $0x200] sm:$0xff]  ;;  %v254_v11 = vld [vmem:[%s1555_s22 + $0x28] sm:$0xff]  ;;  %s964_s8 = sshll.u32 %s230_s26, 4  ;;  %p1932_p12 = scmp.ne.s32.totalorder %s1919_s27, 0  ;;  %s1869_s8 = int_to_ptr.vmem [resolvable:$true] %s964_s8 }
  0x3b   : > { %v1137_v8 = vpack.c.bf16 %v251_v6, %v249_v5  ;;  %v315_v10 = vld [vmem:[%s1555_s22 + $0x210] sm:$0xff]  ;;  %1136 = vmatprep.subr.bf16.mxu0 %v1135_v3  ;;  %v256_v13 = vld [vmem:[%s1555_s22 + $0x38] sm:$0xff]  ;;  %v318_v14 = vld [vmem:[%s1555_s22 + $0x228] sm:$0xff]  ;;  %s1940_s10 = smov (!%p233_p6, %s1053_s10), 7  ;;  %s1347_s25 = scalar_lea.vmem %s1869_s8, 64 }
  0x3c   : > { %v1201_v12 = vpack.c.bf16 %v315_v10, %v313_v9  ;;  %v320_v15 = vld [vmem:[%s1555_s22 + $0x238] sm:$0xff]  ;;  %1200 = vmatprep.subr.bf16.mxu1 %v1199_v7  ;;  %v1139_v16 = vpack.c.bf16 %v256_v13, %v254_v11  ;;  %v253_v18 = vld [vmem:[%s1555_s22 + $0x20] sm:$0xff]  ;;  %v255_v19 = vld [vmem:[%s1555_s22 + $0x30] sm:$0xff]  ;;  %s235_s23 = scalar_lea.vmem %s1912_s1, %s1940_s10  ;;  %p1348_p11 = scmp.ne.s32.totalorder %s1869_s8, %s1347_s25 }
  0x3d   : > { %1138 = vmatpush1.bf16.xpose.msra.mxu0 %v1137_v8  ;;  %v1203_v17 = vpack.c.bf16 %v320_v15, %v318_v14  ;;  %v317_v20 = vld [vmem:[%s1555_s22 + $0x220] sm:$0xff]  ;;  %v319_v21 = vld [vmem:[%s1555_s22 + $0x230] sm:$0xff]  ;;  %v258_v22 = vld [vmem:[%s1555_s22 + $0x48] sm:$0xff]  ;;  %v1141_v26 = vpack.c.bf16 %v255_v19, %v253_v18 }
  0x3e   : > { %1202 = vmatpush1.bf16.xpose.msra.mxu1 %v1201_v12  ;;  %1140 = vmatprep.subr.bf16.mxu0 %v1139_v16  ;;  %v260_v23 = vld [vmem:[%s1555_s22 + $0x58] sm:$0xff]  ;;  %v322_v24 = vld [vmem:[%s1555_s22 + $0x248] sm:$0xff]  ;;  %v1205_v27 = vpack.c.bf16 %v319_v21, %v317_v20  ;;  %v257_v30 = vld [vmem:[%s1555_s22 + $0x40] sm:$0xff]  ;;  %p1349_p13 = pnand %p1348_p11, %p1932_p12 }
  0x3f   : > { %1204 = vmatprep.subr.bf16.mxu1 %v1203_v17  ;;  %v324_v25 = vld [vmem:[%s1555_s22 + $0x258] sm:$0xff]  ;;  %v1143_v28 = vpack.c.bf16 %v260_v23, %v258_v22  ;;  %v259_v31 = vld [vmem:[%s1555_s22 + $0x50] sm:$0xff]  ;;  %v321_v32 = vld [vmem:[%s1555_s22 + $0x240] sm:$0xff] }
  0x40   : > { %v1207_v29 = vpack.c.bf16 %v324_v25, %v322_v24  ;;  %v323_v33 = vld [vmem:[%s1555_s22 + $0x250] sm:$0xff]  ;;  %v262_v34 = vld [vmem:[%s1555_s22 + $0x68] sm:$0xff]  ;;  %v264_v35 = vld [vmem:[%s1555_s22 + $0x78] sm:$0xff]  ;;  %v1145_v38 = vpack.c.bf16 %v259_v31, %v257_v30  ;;  %p1350_p8 = pneg %p1349_p13 }
  0x41   : > { %v326_v36 = vld [vmem:[%s1555_s22 + $0x268] sm:$0xff]  ;;  %v328_v37 = vld [vmem:[%s1555_s22 + $0x278] sm:$0xff]  ;;  %v1209_v39 = vpack.c.bf16 %v323_v33, %v321_v32  ;;  %v1147_v40 = vpack.c.bf16 %v264_v35, %v262_v34  ;;  %v261_v42 = vld [vmem:[%s1555_s22 + $0x60] sm:$0xff] }
  0x42   : > { %v1211_v41 = vpack.c.bf16 %v328_v37, %v326_v36  ;;  %v263_v43 = vld [vmem:[%s1555_s22 + $0x70] sm:$0xff]  ;;  %v325_v44 = vld [vmem:[%s1555_s22 + $0x260] sm:$0xff]  ;;  %v266_v46 = vld [vmem:[%s1555_s22 + $0x88] sm:$0xff] }
  0x43   : > { %v327_v45 = vld [vmem:[%s1555_s22 + $0x270] sm:$0xff]  ;;  %v268_v47 = vld [vmem:[%s1555_s22 + $0x98] sm:$0xff]  ;;  %v330_v48 = vld [vmem:[%s1555_s22 + $0x288] sm:$0xff]  ;;  %v1149_v50 = vpack.c.bf16 %v263_v43, %v261_v42 }
  0x44   : > { %v332_v49 = vld [vmem:[%s1555_s22 + $0x298] sm:$0xff]  ;;  %v1213_v51 = vpack.c.bf16 %v327_v45, %v325_v44  ;;  %v1151_v52 = vpack.c.bf16 %v268_v47, %v266_v46  ;;  %v265_v54 = vld [vmem:[%s1555_s22 + $0x80] sm:$0xff]  ;;  %v267_v55 = vld [vmem:[%s1555_s22 + $0x90] sm:$0xff] }
  0x45   : > { %1142 = vmatpush1.bf16.xpose.msra.mxu0 %v1141_v26  ;;  %v1215_v53 = vpack.c.bf16 %v332_v49, %v330_v48  ;;  %v329_v56 = vld [vmem:[%s1555_s22 + $0x280] sm:$0xff]  ;;  %v331_v57 = vld [vmem:[%s1555_s22 + $0x290] sm:$0xff]  ;;  %v270_v58 = vld [vmem:[%s1555_s22 + $0xa8] sm:$0xff]  ;;  %v1153_v62 = vpack.c.bf16 %v267_v55, %v265_v54 }
  0x46   : > { %1206 = vmatpush1.bf16.xpose.msra.mxu1 %v1205_v27  ;;  %1144 = vmatprep.subr.bf16.mxu0 %v1143_v28  ;;  %v272_v59 = vld [vmem:[%s1555_s22 + $0xb8] sm:$0xff]  ;;  %v334_v60 = vld [vmem:[%s1555_s22 + $0x2a8] sm:$0xff]  ;;  %v1217_v63 = vpack.c.bf16 %v331_v57, %v329_v56  ;;  %v269_v2 = vld [vmem:[%s1555_s22 + $0xa0] sm:$0xff] }
  0x47   : > { %1208 = vmatprep.subr.bf16.mxu1 %v1207_v29  ;;  %v336_v61 = vld [vmem:[%s1555_s22 + $0x2b8] sm:$0xff]  ;;  %v1155_v0 = vpack.c.bf16 %v272_v59, %v270_v58  ;;  %v271_v3 = vld [vmem:[%s1555_s22 + $0xb0] sm:$0xff]  ;;  %v333_v4 = vld [vmem:[%s1555_s22 + $0x2a0] sm:$0xff] }
  0x48   : > { %v1219_v1 = vpack.c.bf16 %v336_v61, %v334_v60  ;;  %v335_v5 = vld [vmem:[%s1555_s22 + $0x2b0] sm:$0xff]  ;;  %v274_v6 = vld [vmem:[%s1555_s22 + $0xc8] sm:$0xff]  ;;  %v276_v7 = vld [vmem:[%s1555_s22 + $0xd8] sm:$0xff]  ;;  %v1157_v10 = vpack.c.bf16 %v271_v3, %v269_v2 }
  0x49   : > { %v338_v8 = vld [vmem:[%s1555_s22 + $0x2c8] sm:$0xff]  ;;  %v340_v9 = vld [vmem:[%s1555_s22 + $0x2d8] sm:$0xff]  ;;  %v1221_v11 = vpack.c.bf16 %v335_v5, %v333_v4  ;;  %v1159_v12 = vpack.c.bf16 %v276_v7, %v274_v6  ;;  %v273_v15 = vld [vmem:[%s1555_s22 + $0xc0] sm:$0xff] }
  0x4a   : > { %v1223_v13 = vpack.c.bf16 %v340_v9, %v338_v8  ;;  %v240_v14 = vld [vmem:[%s1913_s2 + $0x8] sm:$0xff]  ;;  %v275_v16 = vld [vmem:[%s1555_s22 + $0xd0] sm:$0xff]  ;;  %v337_v17 = vld [vmem:[%s1555_s22 + $0x2c0] sm:$0xff] }
  0x4b   : > { %441 = vmatprep.mubr.f32.mxu0 %v240_v14  ;;  %536 = vmatprep.mubr.f32.mxu1 %v240_v14  ;;  %v339_v18 = vld [vmem:[%s1555_s22 + $0x2d0] sm:$0xff]  ;;  %v278_v19 = vld [vmem:[%s1555_s22 + $0xe8] sm:$0xff]  ;;  %v280_v20 = vld [vmem:[%s1555_s22 + $0xf8] sm:$0xff]  ;;  %v1161_v23 = vpack.c.bf16 %v275_v16, %v273_v15 }
  0x4c   : > { %v342_v21 = vld [vmem:[%s1555_s22 + $0x2e8] sm:$0xff]  ;;  %v344_v22 = vld [vmem:[%s1555_s22 + $0x2f8] sm:$0xff]  ;;  %v1225_v24 = vpack.c.bf16 %v339_v18, %v337_v17  ;;  %v1163_v25 = vpack.c.bf16 %v280_v20, %v278_v19  ;;  %v277_v27 = vld [vmem:[%s1555_s22 + $0xe0] sm:$0xff] }
  0x4d   : > { %1146 = vmatpush1.bf16.xpose.msra.mxu0 %v1145_v38  ;;  %v1227_v26 = vpack.c.bf16 %v344_v22, %v342_v21  ;;  %v279_v28 = vld [vmem:[%s1555_s22 + $0xf0] sm:$0xff]  ;;  %v341_v29 = vld [vmem:[%s1555_s22 + $0x2e0] sm:$0xff]  ;;  %v282_v31 = vld [vmem:[%s1555_s22 + $0x108] sm:$0xff] }
  0x4e   : > { %1210 = vmatpush1.bf16.xpose.msra.mxu1 %v1209_v39  ;;  %1148 = vmatprep.subr.bf16.mxu0 %v1147_v40  ;;  %v343_v30 = vld [vmem:[%s1555_s22 + $0x2f0] sm:$0xff]  ;;  %v284_v32 = vld [vmem:[%s1555_s22 + $0x118] sm:$0xff]  ;;  %v346_v33 = vld [vmem:[%s1555_s22 + $0x308] sm:$0xff]  ;;  %v1165_v35 = vpack.c.bf16 %v279_v28, %v277_v27 }
  0x4f   : > { %1212 = vmatprep.subr.bf16.mxu1 %v1211_v41  ;;  %v348_v34 = vld [vmem:[%s1555_s22 + $0x318] sm:$0xff]  ;;  %v1229_v36 = vpack.c.bf16 %v343_v30, %v341_v29  ;;  %v1167_v37 = vpack.c.bf16 %v284_v32, %v282_v31  ;;  %v281_v39 = vld [vmem:[%s1555_s22 + $0x100] sm:$0xff]  ;;  %v283_v40 = vld [vmem:[%s1555_s22 + $0x110] sm:$0xff] }
  0x50   : > { %v1231_v38 = vpack.c.bf16 %v348_v34, %v346_v33  ;;  %v345_v41 = vld [vmem:[%s1555_s22 + $0x300] sm:$0xff]  ;;  %v347_v42 = vld [vmem:[%s1555_s22 + $0x310] sm:$0xff]  ;;  %v286_v43 = vld [vmem:[%s1555_s22 + $0x128] sm:$0xff]  ;;  %v1169_v47 = vpack.c.bf16 %v283_v40, %v281_v39 }
  0x51   : > { %v288_v44 = vld [vmem:[%s1555_s22 + $0x138] sm:$0xff]  ;;  %v350_v45 = vld [vmem:[%s1555_s22 + $0x328] sm:$0xff]  ;;  %v1233_v48 = vpack.c.bf16 %v347_v42, %v345_v41  ;;  %v351_v54 = vld [vmem:[%s1555_s22 + $0x330] sm:$0xff] }
  0x52   : > { %v352_v46 = vld [vmem:[%s1555_s22 + $0x338] sm:$0xff]  ;;  %v1171_v49 = vpack.c.bf16 %v288_v44, %v286_v43  ;;  %v290_v55 = vld [vmem:[%s1555_s22 + $0x148] sm:$0xff]  ;;  %v355_v2 = vld [vmem:[%s1555_s22 + $0x350] sm:$0xff]  ;;  %v567_v43 = vlaneseq }
  0x53   : > { %v292_v56 = vld [vmem:[%s1555_s22 + $0x158] sm:$0xff]  ;;  %v354_v57 = vld [vmem:[%s1555_s22 + $0x348] sm:$0xff]  ;;  %v359_v14 = vld [vmem:[%s1555_s22 + $0x370] sm:$0xff] }
  0x54   : > { %v356_v58 = vld [vmem:[%s1555_s22 + $0x358] sm:$0xff]  ;;  %v1175_v61 = vpack.c.bf16 %v292_v56, %v290_v55  ;;  %v294_v3 = vld [vmem:[%s1555_s22 + $0x168] sm:$0xff] }
  0x55   : > { %1150 = vmatpush1.bf16.xpose.msra.mxu0 %v1149_v50  ;;  %v1235_v50 = vpack.c.bf16 %v352_v46, %v350_v45  ;;  %v296_v4 = vld [vmem:[%s1555_s22 + $0x178] sm:$0xff]  ;;  %v358_v5 = vld [vmem:[%s1555_s22 + $0x368] sm:$0xff] }
  0x56   : > { %1214 = vmatpush1.bf16.xpose.msra.mxu1 %v1213_v51  ;;  %1152 = vmatprep.subr.bf16.mxu0 %v1151_v52  ;;  %v285_v51 = vld [vmem:[%s1555_s22 + $0x120] sm:$0xff]  ;;  %v287_v52 = vld [vmem:[%s1555_s22 + $0x130] sm:$0xff]  ;;  %v360_v6 = vld [vmem:[%s1555_s22 + $0x378] sm:$0xff]  ;;  %v1179_v9 = vpack.c.bf16 %v296_v4, %v294_v3 }
  0x57   : > { %1216 = vmatprep.subr.bf16.mxu1 %v1215_v53  ;;  %v349_v53 = vld [vmem:[%s1555_s22 + $0x320] sm:$0xff]  ;;  %v1173_v59 = vpack.c.bf16 %v287_v52, %v285_v51  ;;  %v298_v15 = vld [vmem:[%s1555_s22 + $0x188] sm:$0xff]  ;;  %v300_v16 = vld [vmem:[%s1555_s22 + $0x198] sm:$0xff] }
  0x58   : > { %v1237_v60 = vpack.c.bf16 %v351_v54, %v349_v53  ;;  %v362_v17 = vld [vmem:[%s1555_s22 + $0x388] sm:$0xff]  ;;  %v364_v18 = vld [vmem:[%s1555_s22 + $0x398] sm:$0xff]  ;;  %v1183_v21 = vpack.c.bf16 %v300_v16, %v298_v15  ;;  %v369_v51 = vld [vmem:[%s1555_s22 + $0x3c0] sm:$0xff]  ;;  %v1418_v15 = vmov 1.0|1.0  }
  0x59   : > { %v1247_v22 = vpack.c.bf16 %v364_v18, %v362_v17  ;;  %v302_v27 = vld [vmem:[%s1555_s22 + $0x1a8] sm:$0xff]  ;;  %v304_v28 = vld [vmem:[%s1555_s22 + $0x1b8] sm:$0xff]  ;;  %v371_v52 = vld [vmem:[%s1555_s22 + $0x3d0] sm:$0xff] }
  0x5a   : > { %v366_v29 = vld [vmem:[%s1555_s22 + $0x3a8] sm:$0xff]  ;;  %v368_v30 = vld [vmem:[%s1555_s22 + $0x3b8] sm:$0xff]  ;;  %v1187_v33 = vpack.c.bf16 %v304_v28, %v302_v27  ;;  %v309_v3 = vld [vmem:[%s1555_s22 + $0x1e0] sm:$0xff] }
  0x5b   : > { %v1251_v34 = vpack.c.bf16 %v368_v30, %v366_v29  ;;  %v306_v39 = vld [vmem:[%s1555_s22 + $0x1c8] sm:$0xff]  ;;  %v308_v40 = vld [vmem:[%s1555_s22 + $0x1d8] sm:$0xff]  ;;  %v311_v4 = vld [vmem:[%s1555_s22 + $0x1f0] sm:$0xff] }
  0x5c   : > { %v370_v41 = vld [vmem:[%s1555_s22 + $0x3c8] sm:$0xff]  ;;  %v372_v42 = vld [vmem:[%s1555_s22 + $0x3d8] sm:$0xff]  ;;  %v1191_v46 = vpack.c.bf16 %v308_v40, %v306_v39  ;;  %v239_v16 = vld [vmem:[%s1913_s2] sm:$0xff] }
  0x5d   : > { %1154 = vmatpush1.bf16.xpose.msra.mxu0 %v1153_v62  ;;  %v1239_v62 = vpack.c.bf16 %v356_v58, %v354_v57  ;;  %v310_v53 = vld [vmem:[%s1555_s22 + $0x1e8] sm:$0xff]  ;;  %v312_v54 = vld [vmem:[%s1555_s22 + $0x1f8] sm:$0xff]  ;;  %v243_v28 = vld [vmem:[%s1913_s2 + $0x20] sm:$0xff] }
  0x5e   : > { %1218 = vmatpush1.bf16.xpose.msra.mxu1 %v1217_v63  ;;  %1156 = vmatprep.subr.bf16.mxu0 %v1155_v0  ;;  %v289_v63 = vld [vmem:[%s1555_s22 + $0x140] sm:$0xff]  ;;  %v291_v0 = vld [vmem:[%s1555_s22 + $0x150] sm:$0xff]  ;;  %v374_v55 = vld [vmem:[%s1555_s22 + $0x3e8] sm:$0xff] }
  0x5f   : > { %1220 = vmatprep.subr.bf16.mxu1 %v1219_v1  ;;  %v353_v1 = vld [vmem:[%s1555_s22 + $0x340] sm:$0xff]  ;;  %v1177_v7 = vpack.c.bf16 %v291_v0, %v289_v63  ;;  %v376_v56 = vld [vmem:[%s1555_s22 + $0x3f8] sm:$0xff] }
  0x60   : > { %v1241_v8 = vpack.c.bf16 %v355_v2, %v353_v1  ;;  %v1259_v63 = vpack.c.bf16 %v376_v56, %v374_v55  ;;  %v246_v29 = vld [vmem:[%s1913_s2 + $0x38] sm:$0xff] }
  0x65   : > { %1158 = vmatpush1.bf16.xpose.msra.mxu0 %v1157_v10  ;;  %v1243_v10 = vpack.c.bf16 %v360_v6, %v358_v5  ;;  %v373_v5 = vld [vmem:[%s1555_s22 + $0x3e0] sm:$0xff]  ;;  %v375_v6 = vld [vmem:[%s1555_s22 + $0x3f0] sm:$0xff] }
  0x66   : > { %1222 = vmatpush1.bf16.xpose.msra.mxu1 %v1221_v11  ;;  %1160 = vmatprep.subr.bf16.mxu0 %v1159_v12  ;;  %v293_v11 = vld [vmem:[%s1555_s22 + $0x160] sm:$0xff]  ;;  %v295_v12 = vld [vmem:[%s1555_s22 + $0x170] sm:$0xff] }
  0x67   : > { %1224 = vmatprep.subr.bf16.mxu1 %v1223_v13  ;;  %v357_v13 = vld [vmem:[%s1555_s22 + $0x360] sm:$0xff]  ;;  %v1181_v19 = vpack.c.bf16 %v295_v12, %v293_v11 }
  0x68   : > { %v1245_v20 = vpack.c.bf16 %v359_v14, %v357_v13 }
  0x6d   : > { %1162 = vmatpush1.bf16.xpose.msra.mxu0 %v1161_v23  ;;  %v297_v23 = vld [vmem:[%s1555_s22 + $0x180] sm:$0xff] }
  0x6e   : > { %1226 = vmatpush1.bf16.xpose.msra.mxu1 %v1225_v24  ;;  %1164 = vmatprep.subr.bf16.mxu0 %v1163_v25  ;;  %v299_v24 = vld [vmem:[%s1555_s22 + $0x190] sm:$0xff]  ;;  %v361_v25 = vld [vmem:[%s1555_s22 + $0x380] sm:$0xff] }
  0x6f   : > { %1228 = vmatprep.subr.bf16.mxu1 %v1227_v26  ;;  %v363_v26 = vld [vmem:[%s1555_s22 + $0x390] sm:$0xff]  ;;  %v1185_v31 = vpack.c.bf16 %v299_v24, %v297_v23 }
  0x70   : > { %v1249_v32 = vpack.c.bf16 %v363_v26, %v361_v25  ;;  %v244_v26 = vld [vmem:[%s1913_s2 + $0x28] sm:$0xff] }
  0x75   : > { %1166 = vmatpush1.bf16.xpose.msra.mxu0 %v1165_v35  ;;  %v301_v35 = vld [vmem:[%s1555_s22 + $0x1a0] sm:$0xff] }
  0x76   : > { %1230 = vmatpush1.bf16.xpose.msra.mxu1 %v1229_v36  ;;  %1168 = vmatprep.subr.bf16.mxu0 %v1167_v37  ;;  %v303_v36 = vld [vmem:[%s1555_s22 + $0x1b0] sm:$0xff]  ;;  %v365_v37 = vld [vmem:[%s1555_s22 + $0x3a0] sm:$0xff] }
  0x77   : > { %1232 = vmatprep.subr.bf16.mxu1 %v1231_v38  ;;  %v367_v38 = vld [vmem:[%s1555_s22 + $0x3b0] sm:$0xff]  ;;  %v1189_v44 = vpack.c.bf16 %v303_v36, %v301_v35  ;;  %v1419_v35 = vmov 0   ;;  %v1315_v36 = vld [vmem:[%s1914_s3 + $0x8] sm:$0xff]  }
  0x78   : > { %v1253_v45 = vpack.c.bf16 %v367_v38, %v365_v37  ;;  %v1316_v37 = vld [vmem:[%s1914_s3 + $0x10] ss:$0 sps:$4 sm:$0xff]  }
  0x7d   : > { %1170 = vmatpush1.bf16.xpose.msra.mxu0 %v1169_v47  ;;  %v1255_v47 = vpack.c.bf16 %v372_v42, %v370_v41 }
  0x7e   : > { %1234 = vmatpush1.bf16.xpose.msra.mxu1 %v1233_v48  ;;  %1172 = vmatprep.subr.bf16.mxu0 %v1171_v49  ;;  %v1682_v48 = vshrl.u32 %v567_v43, 7  ;;  %v305_v49 = vld [vmem:[%s1555_s22 + $0x1c0] sm:$0xff] }
  0x7f   : > { %1236 = vmatprep.subr.bf16.mxu1 %v1235_v50  ;;  %v307_v50 = vld [vmem:[%s1555_s22 + $0x1d0] sm:$0xff]  ;;  %s1134_s22 = sshll.u32 %s1468_s19, 6  ;;  %s1421_s19 = smov [#allocation5]  }
  0x80   : > { %v583_v57 = vsub.s32 1, %v1682_v48  ;;  %v1193_v58 = vpack.c.bf16 %v307_v50, %v305_v49  ;;  %v569_v0 = vadd.s32 8, %v1682_v48  ;;  %v570_v13 = vadd.s32 16, %v1682_v48  ;;  %s1867_s12 = scalar_lea.hbm %s1915_s4, %s1134_s22  ;;  %s1351_s29 = sshll.u32 %s1421_s19, 4  ;;  %s1352_s29 = int_to_ptr.vmem [resolvable:$false] %s1351_s29 }
  0x81   : > { %v571_v14 = vadd.s32 24, %v1682_v48  ;;  %v572_v17 = vadd.s32 32, %v1682_v48  ;;  %v573_v18 = vadd.s32 40, %v1682_v48  ;;  %v574_v24 = vadd.s32 48, %v1682_v48  ;;  %s1353_s30 = scalar_lea.vmem %s1352_s29, 128  ;;  %p1354_p10 = scmp.lt.s32.totalorder %s1869_s8, %s1352_s29 }
  0x82   : > { %v575_v25 = vadd.s32 56, %v1682_v48  ;;  %p1355_p0 = scmp.lt.s32.totalorder %s1353_s30, %s1347_s25 }
  0x84   : > { %p1356_p2 = por %p1355_p0, %p1354_p10 }
  0x85   : > { %1174 = vmatpush1.bf16.xpose.msra.mxu0 %v1173_v59  ;;  %v576_v59 = vld [vmem:[%s235_s23] sm:$0xf]  ;;  %s950_s23 = scalar_lea.sflag [#allocation4], %s1551_s13 }
  0x86   : > { %1238 = vmatpush1.bf16.xpose.msra.mxu1 %v1237_v60  ;;  %1176 = vmatprep.subr.bf16.mxu0 %v1175_v61  ;;  %v591_v60 = vsub.s32 3, %v1682_v48  ;;  %v1257_v61 = vpack.c.bf16 %v371_v52, %v369_v51  ;;  %v1698_v1 = vrot.slane %v576_v59, %v583_v57  ;;  %p1357_p4 = pnand %p1356_p2, %p1350_p8 }
  0x87   : > { %1240 = vmatprep.subr.bf16.mxu1 %v1239_v62  ;;  %v1195_v62 = vpack.c.bf16 %v312_v54, %v310_v53 }
  0x88   : > { %v1700_v2 = vrot.slane %v576_v59, %v591_v60  ;;  %vm594_vm0 = vcmp.eq.s32.totalorder %v1682_v48, %v1698_v1  ;;  %vm598_vm1 = vcmp.eq.s32.totalorder %v569_v0, %v1698_v1  ;;  %vm602_vm10 = vcmp.eq.s32.totalorder %v570_v13, %v1698_v1 }
  0x89   : > { %vm1089_vm4 = vmpackc.low %vm598_vm1, %vm594_vm0  ;;  %vm606_vm11 = vcmp.eq.s32.totalorder %v571_v14, %v1698_v1 }
  0x8a   : > { %vm596_vm2 = vcmp.eq.s32.totalorder %v1682_v48, %v1700_v2  ;;  %vm600_vm3 = vcmp.eq.s32.totalorder %v569_v0, %v1700_v2  ;;  %vm604_vm13 = vcmp.eq.s32.totalorder %v570_v13, %v1700_v2  ;;  %vm608_vm14 = vcmp.eq.s32.totalorder %v571_v14, %v1700_v2 }
  0x8b   : > { %vm1108_vm5 = vmpackc.low %vm600_vm3, %vm596_vm2 }
  0x8c   : > { %vm1746_vm2 = vmpackc.low %vm606_vm11, %vm602_vm10  ;;  %vm616_vm10 = vcmp.eq.s32.totalorder %v573_v18, %v1700_v2 }
  0x8d   : > { %1178 = vmatpush1.bf16.xpose.msra.mxu0 %v1177_v7  ;;  %v579_v7 = vsub.s32 0, %v1682_v48 }
  0x8e   : > { %1242 = vmatpush1.bf16.xpose.msra.mxu1 %v1241_v8  ;;  %1180 = vmatprep.subr.bf16.mxu0 %v1179_v9  ;;  %v587_v8 = vsub.s32 2, %v1682_v48  ;;  %v1197_v9 = vpack.c.bf16 %v311_v4, %v309_v3 }
  0x8f   : > { %1244 = vmatprep.subr.bf16.mxu1 %v1243_v10  ;;  %v1261_v10 = vpack.c.bf16 %v375_v6, %v373_v5  ;;  %v1714_v11 = vrot.slane %v576_v59, %v579_v7 }
  0x90   : > { %v1716_v12 = vrot.slane %v576_v59, %v587_v8 }
  0x91   : > { %vm593_vm6 = vcmp.eq.s32.totalorder %v1682_v48, %v1714_v11  ;;  %vm597_vm7 = vcmp.eq.s32.totalorder %v569_v0, %v1714_v11  ;;  %vm601_vm0 = vcmp.eq.s32.totalorder %v570_v13, %v1714_v11  ;;  %vm605_vm1 = vcmp.eq.s32.totalorder %v571_v14, %v1714_v11 }
  0x92   : > { %vm595_vm8 = vcmp.eq.s32.totalorder %v1682_v48, %v1716_v12  ;;  %vm599_vm9 = vcmp.eq.s32.totalorder %v569_v0, %v1716_v12  ;;  %vm1091_vm12 = vmpackc.low %vm597_vm7, %vm593_vm6  ;;  %vm603_vm3 = vcmp.eq.s32.totalorder %v570_v13, %v1716_v12  ;;  %vm610_vm6 = vcmp.eq.s32.totalorder %v572_v17, %v1698_v1 }
  0x93   : > { %vm1737_vm15 = vmpackc.low %vm599_vm9, %vm595_vm8  ;;  %vm614_vm7 = vcmp.eq.s32.totalorder %v573_v18, %v1698_v1  ;;  %vm612_vm9 = vcmp.eq.s32.totalorder %v572_v17, %v1700_v2 }
  0x94   : > { %vm1095_vm8 = vmpackc.low %vm605_vm1, %vm601_vm0  ;;  %vm615_vm0 = vcmp.eq.s32.totalorder %v573_v18, %v1716_v12 }
  0x95   : > { %1182 = vmatpush1.bf16.xpose.msra.mxu0 %v1181_v19  ;;  %vm1116_vm1 = vmpackc.low %vm616_vm10, %vm612_vm9  ;;  %vm617_vm9 = vcmp.eq.s32.totalorder %v574_v24, %v1714_v11  ;;  %vm621_vm10 = vcmp.eq.s32.totalorder %v575_v25, %v1714_v11 }
  0x96   : > { %1246 = vmatpush1.bf16.xpose.msra.mxu1 %v1245_v20  ;;  %1184 = vmatprep.subr.bf16.mxu0 %v1183_v21  ;;  %v242_v20 = vld [vmem:[%s1913_s2 + $0x18] sm:$0xff] }
  0x97   : > { %1248 = vmatprep.subr.bf16.mxu1 %v1247_v22  ;;  %v241_v22 = vld [vmem:[%s1913_s2 + $0x10] sm:$0xff] }
  0x9d   : > { %1186 = vmatpush1.bf16.xpose.msra.mxu0 %v1185_v31  ;;  %v245_v31 = vld [vmem:[%s1913_s2 + $0x30] sm:$0xff] }
  0x9e   : > { %1250 = vmatpush1.bf16.xpose.msra.mxu1 %v1249_v32  ;;  %1188 = vmatprep.subr.bf16.mxu0 %v1187_v33  ;;  %v248_v32 = vld [vmem:[%s1913_s2 + $0x48] sm:$0xff]  ;;  %v247_v33 = vld [vmem:[%s1913_s2 + $0x40] sm:$0xff] }
  0x9f   : > { %1252 = vmatprep.subr.bf16.mxu1 %v1251_v34  ;;  %v1314_v34 = vld [vmem:[%s1914_s3] sm:$0xff]  }
  0xa5   : > { %1190 = vmatpush1.bf16.xpose.msra.mxu0 %v1189_v44 }
  0xa6   : > { %1254 = vmatpush1.bf16.xpose.msra.mxu1 %v1253_v45  ;;  %1192 = vmatprep.subr.bf16.mxu0 %v1191_v46 }
  0xa7   : > { %1256 = vmatprep.subr.bf16.mxu1 %v1255_v47 }
  0xad   : > { %1194 = vmatpush1.bf16.xpose.msra.mxu0 %v1193_v58 }
  0xae   : > { %1258 = vmatpush1.bf16.xpose.msra.mxu1 %v1257_v61  ;;  %1196 = vmatprep.subr.bf16.mxu0 %v1195_v62 }
  0xaf   : > { %1260 = vmatprep.subr.bf16.mxu1 %v1259_v63 }
  0xb5   : > { %1198 = vmatpush1.bf16.xpose.msra.mxu0 %v1197_v9 }
  0xb6   : > { %1262 = vmatpush1.bf16.xpose.msra.mxu1 %v1261_v10  ;;  %1090 = vmatprep.subr.msk.bf16.mxu0 %vm1089_vm4, %v1418_v15  ;;  %vm607_vm4 = vcmp.eq.s32.totalorder %v571_v14, %v1716_v12 }
  0xb7   : > { %1109 = vmatprep.subr.msk.bf16.mxu1 %vm1108_vm5, %v1418_v15  ;;  %vm1756_vm5 = vmpackc.low %vm608_vm14, %vm604_vm13  ;;  %vm613_vm13 = vcmp.eq.s32.totalorder %v573_v18, %v1714_v11 }
  0xb8   : > { %vm1114_vm11 = vmpackc.low %vm607_vm4, %vm603_vm3  ;;  %vm622_vm3 = vcmp.eq.s32.totalorder %v575_v25, %v1698_v1 }
  0xb9   : > { %vm1792_vm14 = vmpackc.low %vm614_vm7, %vm610_vm6  ;;  %vm624_vm6 = vcmp.eq.s32.totalorder %v575_v25, %v1700_v2 }
  0xbc   : > { %442 = vmatmul.mubr.f32.vlgmr.msra.gmra.mrb[0].mxu0 %v239_v16 }
  0xbd   : > { %537 = vmatmul.mubr.f32.vlgmr.msra.gmra.mrb[0].mxu1 %v239_v16  ;;  %1092 = vmatpush1.bf16.msk.msra.mxu0 %vm1091_vm12, %v1418_v15  ;;  %vm609_vm12 = vcmp.eq.s32.totalorder %v572_v17, %v1714_v11 }
  0xbe   : > { %1111 = vmatpush1.bf16.msk.msra.mxu1 %vm1737_vm15, %v1418_v15  ;;  %447 = vmatprep.mubr.f32.mxu0 %v242_v20  ;;  %vm611_vm15 = vcmp.eq.s32.totalorder %v572_v17, %v1716_v12  ;;  %vm1816_vm4 = vmpackc.low %vm613_vm13, %vm609_vm12  ;;  %vm619_vm12 = vcmp.eq.s32.totalorder %v574_v24, %v1716_v12  ;;  %vm623_vm13 = vcmp.eq.s32.totalorder %v575_v25, %v1716_v12 }
  0xbf   : > { %542 = vmatprep.mubr.f32.mxu1 %v242_v20  ;;  %1094 = vmatprep.subr.msk.bf16.mxu0 %vm1746_vm2, %v1418_v15  ;;  %vm618_vm2 = vcmp.eq.s32.totalorder %v574_v24, %v1698_v1  ;;  %vm1118_vm7 = vmpackc.low %vm615_vm0, %vm611_vm15  ;;  %vm723_vm0 = vcmask 523264  }
  0xc0   : > { %448 = vmatmul.mubr.f32.gmra.mrb[2].mxu0 %v241_v22  ;;  %1113 = vmatprep.subr.msk.bf16.mxu1 %vm1756_vm5, %v1418_v15  ;;  %vm620_vm5 = vcmp.eq.s32.totalorder %v574_v24, %v1700_v2  ;;  %vm1122_vm15 = vmpackc.low %vm623_vm13, %vm619_vm12 }
  0xc1   : > { %543 = vmatmul.mubr.f32.gmra.mrb[2].mxu1 %v241_v22  ;;  %1096 = vmatpush1.bf16.msk.msra.mxu0 %vm1095_vm8, %v1418_v15  ;;  %vm1101_vm8 = vmpackc.low %vm622_vm3, %vm618_vm2 }
  0xc2   : > { %1115 = vmatpush1.bf16.msk.msra.mxu1 %vm1114_vm11, %v1418_v15  ;;  %453 = vmatprep.mubr.f32.mxu0 %v244_v26  ;;  %vm1120_vm11 = vmpackc.low %vm624_vm6, %vm620_vm5 }
  0xc3   : > { %548 = vmatprep.mubr.f32.mxu1 %v244_v26  ;;  %1098 = vmatprep.subr.msk.bf16.mxu0 %vm1792_vm14, %v1418_v15  ;;  %vm1103_vm14 = vmpackc.low %vm621_vm10, %vm617_vm9 }
  0xc4   : > { %454 = vmatmul.mubr.f32.gmra.mrb[4].mxu0 %v243_v28  ;;  %1117 = vmatprep.subr.msk.bf16.mxu1 %vm1116_vm1, %v1418_v15  ;;  %vm946_vm1 = vcmp.lt.s32.totalorder %v567_v43, 512 }
  0xc5   : > { %549 = vmatmul.mubr.f32.gmra.mrb[4].mxu1 %v243_v28  ;;  %459 = vmatprep.mubr.f32.mxu0 %v246_v29 }
  0xc6   : > { %554 = vmatprep.mubr.f32.mxu1 %v246_v29  ;;  %1100 = vmatpush1.bf16.msk.msra.mxu0 %vm1816_vm4, %v1418_v15 }
  0xc7   : > { %1119 = vmatpush1.bf16.msk.msra.mxu1 %vm1118_vm7, %v1418_v15  ;;  %1102 = vmatprep.subr.msk.bf16.mxu0 %vm1101_vm8, %v1418_v15 }
  0xc8   : > { %460 = vmatmul.mubr.f32.gmra.mrb[6].mxu0 %v245_v31  ;;  %1121 = vmatprep.subr.msk.bf16.mxu1 %vm1120_vm11, %v1418_v15 }
  0xc9   : > { %555 = vmatmul.mubr.f32.gmra.mrb[6].mxu1 %v245_v31  ;;  %465 = vmatprep.mubr.f32.mxu0 %v248_v32 }
  0xca   : > { %560 = vmatprep.mubr.f32.mxu1 %v248_v32  ;;  %1104 = vmatpush1.bf16.msk.msra.mxu0 %vm1103_vm14, %v1418_v15 }
  0xcb   : > { %1123 = vmatpush1.bf16.msk.msra.mxu1 %vm1122_vm15, %v1418_v15 }
  0xcc   : > { %466 = vmatmul.mubr.f32.gmra.mrb[8].mxu0 %v247_v33 }
  0xcd   : > { %561 = vmatmul.mubr.f32.gmra.mrb[8].mxu1 %v247_v33  ;;  %765 = vmatprep.mubr.bf16.mxu0 %v1419_v35 }
  0xce   : > { %826 = vmatprep.mubr.bf16.mxu1 %v1419_v35 }
  0xd0   : > { %1105 = vmatmul.mubr.msk.bf16.vlgmr.msra.gmra.mrb[12].mxu0 %vm723_vm0, %v1314_v34 }
  0xd1   : > { %1124 = vmatmul.mubr.msk.bf16.vlgmr.msra.gmra.mrb[12].mxu1 %vm723_vm0, %v1314_v34  ;;  %775 = vmatprep.mubr.bf16.mxu0 %v1419_v35 }
  0xd2   : > { %836 = vmatprep.mubr.bf16.mxu1 %v1419_v35 }
  0xd8   : > { %1106 = vmatmul.mubr.msk.bf16.gmra.mrb[16].mxu0 %vm723_vm0, %v1315_v36 }
  0xd9   : > { %1125 = vmatmul.mubr.msk.bf16.gmra.mrb[16].mxu1 %vm723_vm0, %v1315_v36  ;;  %785 = vmatprep.mubr.bf16.mxu0 %v1419_v35 }
  0xda   : > { %846 = vmatprep.mubr.bf16.mxu1 %v1419_v35 }
  0xe0   : > { %1107 = vmatmul.mubr.msk.bf16.gmra.mrb[20].mxu0 %vm723_vm0, %v1316_v37 }
  0xe1   : > { %1126 = vmatmul.mubr.msk.bf16.gmra.mrb[20].mxu1 %vm723_vm0, %v1316_v37 }
 0x18f   : > { %v443_v38 = vpop.f32.mrb[0].mxu0 }
 0x190   : > { %v538_v39 = vpop.f32.mrb[0].mxu1  ;;  %v445_v40 = vpop.f32.mrb[1].mxu0 }
 0x191   : > { %v540_v41 = vpop.f32.mrb[1].mxu1 }
 0x193   : > { %v449_v42 = vpop.f32.mrb[2].mxu0 }
 0x194   : > { %v544_v44 = vpop.f32.mrb[2].mxu1  ;;  %v451_v45 = vpop.f32.mrb[3].mxu0 }
 0x195   : > { %v546_v46 = vpop.f32.mrb[3].mxu1 }
 0x197   : > { %v455_v47 = vpop.f32.mrb[4].mxu0 }
 0x198   : > { %v550_v49 = vpop.f32.mrb[4].mxu1  ;;  %v457_v50 = vpop.f32.mrb[5].mxu0 }
 0x199   : > { %v552_v51 = vpop.f32.mrb[5].mxu1 }
 0x19b   : > { %v461_v52 = vpop.f32.mrb[6].mxu0 }
 0x19c   : > { %v556_v53 = vpop.f32.mrb[6].mxu1  ;;  %v463_v54 = vpop.f32.mrb[7].mxu0 }
 0x19d   : > { %v558_v55 = vpop.f32.mrb[7].mxu1 }
 0x19f   : > { %v467_v56 = vpop.f32.mrb[8].mxu0 }
 0x1a0   : > { %v562_v57 = vpop.f32.mrb[8].mxu1  ;;  %v469_v58 = vpop.f32.mrb[9].mxu0 }
 0x1a1   : > { %v564_v59 = vpop.f32.mrb[9].mxu1 }
 0x1a3   : > { %v767_v60 = vpop.f32.mrb[12].mxu0 }
 0x1a4   : > { %v855_v61 = vmul.f32 %v767_v60, %v443_v38  ;;  %v828_v62 = vpop.f32.mrb[12].mxu1  ;;  %v769_v63 = vpop.f32.mrb[13].mxu0 }
 0x1a5   : > { %v857_v0 = vmul.f32 %v828_v62, %v538_v39  ;;  %v856_v1 = vmul.f32 %v769_v63, %v445_v40  ;;  %v830_v2 = vpop.f32.mrb[13].mxu1  ;;  %v771_v3 = vpop.f32.mrb[14].mxu0 }
 0x1a6   : > { %v858_v4 = vmul.f32 %v830_v2, %v540_v41  ;;  %v859_v5 = vmul.f32 %v771_v3, %v449_v42  ;;  %v832_v6 = vpop.f32.mrb[14].mxu1  ;;  %v773_v7 = vpop.f32.mrb[15].mxu0 }
 0x1a7   : > { %v861_v8 = vmul.f32 %v832_v6, %v544_v44  ;;  %v860_v9 = vmul.f32 %v773_v7, %v451_v45  ;;  %v834_v10 = vpop.f32.mrb[15].mxu1 }
 0x1a8   : > { %v875_v11 = vadd.f32 %v859_v5, %v855_v61  ;;  %v862_v12 = vmul.f32 %v834_v10, %v546_v46 }
 0x1a9   : > { %v895_v13 = vadd.f32 %v861_v8, %v857_v0  ;;  %v885_v14 = vadd.f32 %v860_v9, %v856_v1 }
 0x1aa   : > { %v905_v15 = vadd.f32 %v862_v12, %v858_v4  ;;  %v1420_v4 = vmov 1966171168  }
 0x1ab   : > { %v777_v16 = vpop.f32.mrb[16].mxu0 }
 0x1ac   : > { %v863_v17 = vmul.f32 %v777_v16, %v455_v47  ;;  %v838_v18 = vpop.f32.mrb[16].mxu1  ;;  %v779_v19 = vpop.f32.mrb[17].mxu0 }
 0x1ad   : > { %v865_v20 = vmul.f32 %v838_v18, %v550_v49  ;;  %v864_v21 = vmul.f32 %v779_v19, %v457_v50  ;;  %v840_v22 = vpop.f32.mrb[17].mxu1  ;;  %v781_v23 = vpop.f32.mrb[18].mxu0 }
 0x1ae   : > { %v876_v24 = vadd.f32 %v875_v11, %v863_v17  ;;  %v866_v25 = vmul.f32 %v840_v22, %v552_v51  ;;  %v867_v26 = vmul.f32 %v781_v23, %v461_v52  ;;  %v842_v27 = vpop.f32.mrb[18].mxu1  ;;  %v783_v28 = vpop.f32.mrb[19].mxu0 }
 0x1af   : > { %v896_v29 = vadd.f32 %v895_v13, %v865_v20  ;;  %v886_v30 = vadd.f32 %v885_v14, %v864_v21  ;;  %v869_v31 = vmul.f32 %v842_v27, %v556_v53  ;;  %v868_v32 = vmul.f32 %v783_v28, %v463_v54  ;;  %v844_v33 = vpop.f32.mrb[19].mxu1 }
 0x1b0   : > { %v906_v34 = vadd.f32 %v905_v15, %v866_v25  ;;  %v877_v35 = vadd.f32 %v876_v24, %v867_v26  ;;  %v870_v36 = vmul.f32 %v844_v33, %v558_v55 }
 0x1b1   : > { %v897_v37 = vadd.f32 %v896_v29, %v869_v31  ;;  %v887_v38 = vadd.f32 %v886_v30, %v868_v32 }
 0x1b2   : > { %v907_v39 = vadd.f32 %v906_v34, %v870_v36 }
 0x1b3   : > { %v787_v40 = vpop.f32.mrb[20].mxu0 }
 0x1b4   : > { %v871_v41 = vmul.f32 %v787_v40, %v467_v56  ;;  %v848_v42 = vpop.f32.mrb[20].mxu1  ;;  %v789_v44 = vpop.f32.mrb[21].mxu0 }
 0x1b5   : > { %v873_v45 = vmul.f32 %v848_v42, %v562_v57  ;;  %v872_v46 = vmul.f32 %v789_v44, %v469_v58  ;;  %v850_v47 = vpop.f32.mrb[21].mxu1  ;;  %v791_v49 = vpop.f32.mrb[22].mxu0  ;;  %v922_v57 = vunpack.c.l.s4 %v1420_v4 }
 0x1b6   : > { %v878_v50 = vadd.f32 %v877_v35, %v871_v41  ;;  %v874_v51 = vmul.f32 %v850_v47, %v564_v59  ;;  %v852_v52 = vpop.f32.mrb[22].mxu1  ;;  %v792_v53 = vpop.f32.mrb[23].mxu0 }
 0x1b7   : > { %v898_v54 = vadd.f32 %v897_v37, %v873_v45  ;;  %v888_v60 = vadd.f32 %v887_v38, %v872_v46  ;;  %v853_v61 = vpop.f32.mrb[23].mxu1  ;;  %v923_v11 = vunpack.c.0.s8 %v922_v57 }
 0x1b8   : > { %v879_v62 = vrot.slane %v878_v50, 4  ;;  %v908_v55 = vadd.f32 %v907_v39, %v874_v51 }
 0x1b9   : > { %v899_v63 = vrot.slane %v898_v54, 4  ;;  %v889_v0 = vrot.slane %v888_v60, 4  ;;  %v926_v20 = vsub.s32 %v923_v11, %v1682_v48 }
 0x1ba   : > { %v880_v1 = vadd.f32 %v879_v62, %v878_v50  ;;  %v909_v2 = vrot.slane %v908_v55, 4 }
 0x1bb   : > { %v900_v56 = vadd.f32 %v899_v63, %v898_v54  ;;  %v890_v3 = vadd.f32 %v889_v0, %v888_v60 }
 0x1bc   : > { %v881_v58 = vrot.slane %v880_v1, 2  ;;  %v910_v5 = vadd.f32 %v909_v2, %v908_v55 }
 0x1bd   : > { %v901_v6 = vrot.slane %v900_v56, 2  ;;  %v891_v59 = vrot.slane %v890_v3, 2 }
 0x1be   : > { %v882_v7 = vadd.f32 %v881_v58, %v880_v1  ;;  %v911_v8 = vrot.slane %v910_v5, 2 }
 0x1bf   : > { %v902_v9 = vadd.f32 %v901_v6, %v900_v56  ;;  %v892_v10 = vadd.f32 %v891_v59, %v890_v3 }
 0x1c0   : > { %v883_v12 = vrot.slane %v882_v7, 1  ;;  %v912_v13 = vadd.f32 %v911_v8, %v910_v5 }
 0x1c1   : > { %v903_v14 = vrot.slane %v902_v9, 1  ;;  %v893_v15 = vrot.slane %v892_v10, 1 }
 0x1c2   : > { %v884_v16 = vadd.f32 %v883_v12, %v882_v7  ;;  %v913_v17 = vrot.slane %v912_v13, 1 }
 0x1c3   : > { %v904_v18 = vadd.f32 %v903_v14, %v902_v9  ;;  %v894_v19 = vadd.f32 %v893_v15, %v892_v10 }
 0x1c4   : > { %v914_v21 = vadd.f32 %v913_v17, %v912_v13 }
 0x1c5   : > { %v919_v22 = vcombine.low %v884_v16, %v894_v19 }
 0x1c6   : > { %v920_v23 = vcombine.low %v904_v18, %v914_v21 }
 0x1c7   : > { %v927_v24 = vrot.slane %v919_v22, %v926_v20 }
 0x1c8   : > { %v934_v25 = vrot.slane %v920_v23, %v926_v20 }
 0x1ca   : > { %v935_v26 = vcombine.low %v927_v24, %v934_v25 }
 0x1cc   : > { %v942_v27 = vrot.slane %v935_v26, %v926_v20 }
 0x1ce   : > { %948 = vst.msk [vmem:[%s230_s26] sm:$0xf] %vm946_vm1, %v942_v27 }
 0x1cf   : > { %1360 = shalt.err (!%p1357_p4)
}
 0x1d0   : > { %s1361_s13 = scalar_lea.hbm %s1867_s12, 64  ;;  %s1365_s7 = scalar_lea.hbm %s1915_s4, 128 }
 0x1d1   : > { %p1362_p5 = scmp.ne.s32.totalorder %s1867_s12, %s1361_s13  ;;  %p1366_p1 = scmp.lt.u32.totalorder %s1867_s12, %s1915_s4 }
 0x1d2   : > { %p1367_p3 = scmp.lt.u32.totalorder %s1365_s7, %s1361_s13  ;;  %p1369_p11 = scmp.lt.u32.totalorder %s1361_s13, %s1867_s12 }
 0x1d3   : > { %p1363_p7 = pnand %p1362_p5, %p1932_p12 }
 0x1d4   : > { %p1368_p6 = por %p1367_p3, %p1366_p1 }
 0x1d5   : > { %p1364_p9 = pneg %p1363_p7 }
 0x1d6   : > { %p1370_p13 = por %p1369_p11, %p1368_p6 }
 0x1d8   : > { %p1371_p8 = pnand %p1370_p13, %p1364_p9 }
 0x1da   : > { %1374 = shalt.err (!%p1371_p8)
}
 0x1db   : > { %1265 = dma.vmem_to_hbm [thread:$0]  (%p1932_p12), %s1869_s8, 64, %s1867_s12, %s950_s23  }
 0x1dc PF: > { %s976_s20 = sand.u32 1, %s1401_s15   ;;  %p1933_p10 = scmp.ne.s32.totalorder %s1920_s28, 0 }
 0x1dd   : > { %p1934_p0 = scmp.ge.s32.totalorder %s1413_s18, 2  ;;  %s977_s22 = scalar_lea.sflag [#allocation4], %s976_s20 }
 0x1df   : > { %p1272_p2 = pnand %p1934_p0, %p1933_p10 }
 0x1e1   : > { %1396 = dma.done.wait (!%p1272_p2), %s977_s22, 64  }
 0x1e2   : > { %1398 = vsyncadd (!%p1272_p2), %s977_s22, 4294967232  ;;  %p17_p4 = scmp.ge.s32.totalorder %s1472_s21, 4   ;;  %s1935_s15 = smov %s1405_s16 }
 0x1e3   : > { %s1936_s16 = smov %s1409_s17  ;;  %s1937_s17 = smov %s1484_s24 }
 0x1e4   : > { %s1938_s18 = smov %s1472_s21  ;;  %19 = sbr.rel (!%p17_p4) target bundleno = 5 (0x5), region = 84 }
 0x1eb   :  { %982 = vsyncpa [#allocation3], 1 }
 0x1ec   :  { %984 = vsyncpa [#allocation3 + $0x1], 1 }
 0x1ed   :  { %985 = vsyncpa [#allocation4], 1 }
 0x1ee   :  { %987 = vsyncpa [#allocation4 + $0x1], 1 }

</bundles_post_ra>
